<compile_context>
chip_gen: v6e
topology: v6e:2x2x1
jax: 0.10.0
libtpu: 0.0.40
codegen_flags: <defaults>
</compile_context>

<pallas_src>
import jax
import jax.numpy as jnp
from jax.experimental import pallas as pl
from jax.experimental.pallas import tpu as pltpu


def _round_up(n, m):
    return ((n + m - 1) // m) * m


def _vmem_capacity_bytes():
    """Physical VMEM per TensorCore; conservative fallback if the query fails."""
    try:
        cap = getattr(pltpu.get_tpu_info(), "vmem_capacity_bytes", None)
        if cap:
            return int(cap)
    except Exception:
        pass
    return 64 * 1024 * 1024  # v7x per-TC VMEM (smallest across v5e/v6e/v7x)


def _patch_embed_kernel(p_ref, w_ref, b_ref, o_ref):
    # p_ref: (TM, K_pad) bf16 patches (streamed over M)
    # w_ref: (K_pad, D_pad) bf16 weight (VMEM-resident, constant block index)
    # b_ref: (1, D_pad) f32 bias (resident)
    # o_ref: (TM, D_pad) output tile
    acc = jnp.dot(p_ref[...], w_ref[...], preferred_element_type=jnp.float32)
    o_ref[...] = (acc + b_ref[...]).astype(o_ref.dtype)


def patch_embed(x, weight, bias, patch_size, *, tm_max=4096, out_dtype=None):
    """x: (B, C, H, W) NCHW; weight: (D, C, P, P) torch Conv2d layout; bias: (D,)."""
    B, C, H, W = x.shape
    P = patch_size
    D = weight.shape[0]
    nH, nW = H // P, W // P
    n_patches = nH * nW
    K = C * P * P
    M = B * n_patches
    out_dtype = x.dtype if out_dtype is None else out_dtype
    out_itemsize = jnp.dtype(out_dtype).itemsize

    # --- glue (plain JAX): unfold non-overlapping patches ---------------------
    # Cast to bf16 FIRST so the transpose/unfold copy is written at 2 B/elem and
    # the kernel reads it back at 2 B/elem (was f32 write + bf16 re-cast before).
    # (B, C, nH, P, nW, P) -> (B, nH, nW, C, P, P) -> (M, K); flatten order of
    # (C, P, P) matches weight.reshape(D, K).
    patches = (
        x.astype(jnp.bfloat16)
        .reshape(B, C, nH, P, nW, P)
        .transpose(0, 2, 4, 1, 3, 5)
        .reshape(M, K)
    )
    w_mat = weight.reshape(D, K).T.astype(jnp.bfloat16)  # (K, D)
    b_mat = bias.astype(jnp.float32).reshape(1, D)       # (1, D), bias added in f32

    # --- MXU / lane-friendly padding -------------------------------------------
    K_pad = _round_up(K, 128)
    D_pad = _round_up(D, 128)  # full D resident: no re-streaming of patches

    # --- generation-aware TM selection ------------------------------------------
    vmem_cap = _vmem_capacity_bytes()
    budget = int(vmem_cap * 0.6)  # leave headroom for compiler scratch / spills

    # Resident weight + bias (Pallas still allocates 2 buffers each by default).
    fixed_bytes = 2 * (K_pad * D_pad * 2) + 2 * (D_pad * 4)

    def _streamed_bytes(tm):
        # double-buffered patches tile + double-buffered output tile
        return 2 * tm * (K_pad * 2 + D_pad * out_itemsize)

    TM = min(_round_up(tm_max, 128), _round_up(M, 128))
    while TM > 128 and fixed_bytes + _streamed_bytes(TM) > budget:
        TM -= 128

    # Prefer >= 2 grid steps so megacore (v7x, 2 TCs) can shard the M axis.
    if TM >= M and M > 256:
        TM = max(128, _round_up((M + 1) // 2, 128))

    M_pad = _round_up(M, TM)
    grid_m = M_pad // TM

    footprint = fixed_bytes + _streamed_bytes(TM)
    vmem_limit = min(
        int(vmem_cap * 0.9),
        max(footprint + 8 * 1024 * 1024, 32 * 1024 * 1024),
    )

    patches_p = jnp.pad(patches, ((0, M_pad - M), (0, K_pad - K)))
    w_p = jnp.pad(w_mat, ((0, K_pad - K), (0, D_pad - D)))
    b_p = jnp.pad(b_mat, ((0, 0), (0, D_pad - D)))

    # Accurate now: patches streamed exactly once, weight/bias read once.
    cost = pl.CostEstimate(
        flops=2 * M_pad * K_pad * D_pad,
        transcendentals=0,
        bytes_accessed=(
            M_pad * K_pad * 2            # bf16 patches (read once)
            + K_pad * D_pad * 2          # bf16 weight (resident)
            + D_pad * 4                  # f32 bias
            + M_pad * D_pad * out_itemsize
        ),
    )

    out_padded = pl.pallas_call(
        _patch_embed_kernel,
        out_shape=jax.ShapeDtypeStruct((M_pad, D_pad), out_dtype),
        grid=(grid_m,),
        in_specs=[
            pl.BlockSpec((TM, K_pad), lambda i: (i, 0)),      # patches: streamed over M
            pl.BlockSpec((K_pad, D_pad), lambda i: (0, 0)),   # weight: resident
            pl.BlockSpec((1, D_pad), lambda i: (0, 0)),       # bias: resident
        ],
        out_specs=pl.BlockSpec((TM, D_pad), lambda i: (i, 0)),
        compiler_params=pltpu.CompilerParams(
            dimension_semantics=("parallel",),
            vmem_limit_bytes=vmem_limit,
        ),
        cost_estimate=cost,
    )(patches_p, w_p, b_p)

    return out_padded[:M, :D].reshape(B, n_patches, D)


if __name__ == "__main__":
    # Small shapes consistent with the module: img_size=16, patch_size=4,
    # in_chans=4, embed_dim=32  ->  n_patches = (16//4)**2 = 16.
    B, C, IMG, P, D = 2, 4, 16, 4, 32

    key = jax.random.PRNGKey(0)
    kx, kw, kb = jax.random.split(key, 3)
    x = jax.random.normal(kx, (B, C, IMG, IMG), dtype=jnp.float32)
    # Deterministic synthetic "Conv2d" parameters (torch layout: (D, C, P, P)).
    weight = jax.random.normal(kw, (D, C, P, P), dtype=jnp.float32) * 0.02
    bias = jax.random.normal(kb, (D,), dtype=jnp.float32) * 0.02

    out = patch_embed(x, weight, bias, P)
    out = jax.block_until_ready(out)

    # Reference check in plain JAX f32 (same patch-unfold + matmul semantics).
    nH, nW = IMG // P, IMG // P
    patches_ref = (
        x.reshape(B, C, nH, P, nW, P)
        .transpose(0, 2, 4, 1, 3, 5)
        .reshape(B, nH * nW, C * P * P)
    )
    ref = jnp.einsum("bnk,kd->bnd", patches_ref, weight.reshape(D, -1).T) + bias

    assert out.shape == (B, (IMG // P) ** 2, D), out.shape
    # bf16 MXU operands with f32 accumulation -> loosened tolerance vs pure f32.
    assert jnp.allclose(out, ref, atol=2e-2, rtol=2e-2), float(jnp.max(jnp.abs(out - ref)))
    print("KERNEL_OK")
</pallas_src>

<mosaic_0001>
module attributes {stable_mosaic.version = 11 : i64} {
  func.func @_patch_embed_kernel(%arg0: i32, %arg1: memref<128x128xbf16, #tpu.memory_space<vmem>>, %arg2: memref<128x128xbf16, #tpu.memory_space<vmem>>, %arg3: memref<1x128xf32, #tpu.memory_space<vmem>>, %arg4: memref<128x128xf32, #tpu.memory_space<vmem>>) attributes {dimension_semantics = [#tpu.dimension_semantics<parallel>], iteration_bounds = array<i64: 1>, scalar_prefetch = 0 : i64, scratch_operands = 0 : i64, tpu.core_type = #tpu.core_type<tc>, window_params = [{transform_indices = @transform_0, window_bounds = array<i64: 128, 128>}, {pipeline_mode = #tpu.pipeline_mode<synchronous>, transform_indices = @transform_1, window_bounds = array<i64: 128, 128>}, {pipeline_mode = #tpu.pipeline_mode<synchronous>, transform_indices = @transform_2, window_bounds = array<i64: 1, 128>}, {transform_indices = @transform_3, window_bounds = array<i64: 128, 128>}]} {
    %c0 = arith.constant 0 : index
    %c0_0 = arith.constant 0 : index
    %0 = vector.load %arg1[%c0, %c0_0] : memref<128x128xbf16, #tpu.memory_space<vmem>>, vector<128x128xbf16>
    %c0_1 = arith.constant 0 : index
    %c0_2 = arith.constant 0 : index
    %1 = vector.load %arg2[%c0_1, %c0_2] : memref<128x128xbf16, #tpu.memory_space<vmem>>, vector<128x128xbf16>
    %cst = arith.constant dense<0.000000e+00> : vector<128x128xf32>
    %2 = tpu.matmul %0, %1, %cst {dimension_numbers = #tpu.dot_dimension_numbers<[1], [0], [0], [1], [0, 0, 1, 1], [], []>} : vector<128x128xbf16>, vector<128x128xbf16>, vector<128x128xf32> -> vector<128x128xf32>
    %c0_3 = arith.constant 0 : index
    %c0_4 = arith.constant 0 : index
    %3 = vector.load %arg3[%c0_3, %c0_4] : memref<1x128xf32, #tpu.memory_space<vmem>>, vector<1x128xf32>
    %4 = vector.broadcast %3 : vector<1x128xf32> to vector<128x128xf32>
    %5 = arith.addf %2, %4 : vector<128x128xf32>
    %c0_5 = arith.constant 0 : index
    %c0_6 = arith.constant 0 : index
    %6 = vector.load %arg4[%c0_5, %c0_6] : memref<128x128xf32, #tpu.memory_space<vmem>>, vector<128x128xf32>
    tpu.vector_store %arg4[%c0_5, %c0_6], %5 {strides = array<i32>} : memref<128x128xf32, #tpu.memory_space<vmem>>, vector<128x128xf32>,
    return
  }
  func.func @transform_0(%arg0: i32) -> (i32, i32) {
    %c0_i32 = arith.constant 0 : i32
    %c0_i32_0 = arith.constant 0 : i32
    return %arg0, %c0_i32 : i32, i32
  }
  func.func @transform_1(%arg0: i32) -> (i32, i32) {
    %c0_i32 = arith.constant 0 : i32
    %c0_i32_0 = arith.constant 0 : i32
    %c0_i32_1 = arith.constant 0 : i32
    return %c0_i32, %c0_i32_0 : i32, i32
  }
  func.func @transform_2(%arg0: i32) -> (i32, i32) {
    %c0_i32 = arith.constant 0 : i32
    %c0_i32_0 = arith.constant 0 : i32
    %c0_i32_1 = arith.constant 0 : i32
    return %c0_i32, %c0_i32_0 : i32, i32
  }
  func.func @transform_3(%arg0: i32) -> (i32, i32) {
    %c0_i32 = arith.constant 0 : i32
    %c0_i32_0 = arith.constant 0 : i32
    return %arg0, %c0_i32 : i32, i32
  }
}

</mosaic_0001>

<bundles_post_ra>
// kernel: tpu_custom_call.1
= control target key start
LH: loop header
LB: loop body
LE: loop exit
PB: predicated region body
PF: predicated region fallthrough
CT: control target
= control target key end

     0   :  { %8 = vsyncpa [#allocation3], 0  ;;  %s519_s0 = inlined_call_operand.hbm [shape: bf16[128,128], index: 0, kind: input, shape index: {}]   ;;  %s520_s1 = inlined_call_operand.hbm [shape: bf16[128,128], index: 1, kind: input, shape index: {}]   ;;  %s521_s2 = inlined_call_operand.vmem [shape: f32[1,128], index: 2, kind: input, shape index: {}]   ;;  %s522_s3 = inlined_call_operand.hbm [shape: f32[128,128], index: 3, kind: output, shape index: {}]  }
   0x1   :  { %9 = vsyncpa [#allocation6], 0 }
   0x2   :  { %10 = vsyncpa [#allocation4], 0  ;;  %s480_s12 = smov [#allocation2]  }
   0x3   :  { %s16_s13 = sshll.u32 %s480_s12, 4  ;;  %s17_s13 = int_to_ptr.vmem [resolvable:$true] %s16_s13 }
   0x4   :  { %s422_s14 = scalar_lea.vmem %s17_s13, 1024  ;;  %p427_p1 = scmp.lt.s32.totalorder %s17_s13, %s17_s13 }
   0x5   :  { %p423_p0 = scmp.ne.s32.totalorder %s17_s13, %s422_s14  ;;  %p428_p2 = scmp.lt.s32.totalorder %s422_s14, %s422_s14 }
   0x7   :  { %p429_p3 = por %p428_p2, %p427_p1 }
   0x9   :  { %p430_p4 = pnand %p429_p3, %p423_p0 }
   0xb   :  { %433 = shalt.err (!%p430_p4)
}
   0xc   :  { %s481_s15 = smov 64   ;;  %s482_s16 = smov 4  }
   0xd   :  { %22 = dma.hbm_to_vmem [thread:$0]  %s519_s0, 1024, %s17_s13, [#allocation3], %s481_s15, %s481_s15, %s482_s16  }
   0xe   :  { %s483_s19 = smov [#allocation5]  }
   0xf   :  { %s28_s20 = sshll.u32 %s483_s19, 4  ;;  %s29_s20 = int_to_ptr.vmem [resolvable:$true] %s28_s20 }
  0x10   :  { %s442_s21 = scalar_lea.vmem %s29_s20, 1024  ;;  %p447_p6 = scmp.lt.s32.totalorder %s29_s20, %s29_s20 }
  0x11   :  { %p443_p5 = scmp.ne.s32.totalorder %s29_s20, %s442_s21  ;;  %p448_p7 = scmp.lt.s32.totalorder %s442_s21, %s442_s21 }
  0x13   :  { %p449_p8 = por %p448_p7, %p447_p6 }
  0x15   :  { %p450_p9 = pnand %p449_p8, %p443_p5 }
  0x17   :  { %453 = shalt.err (!%p450_p9)
}
  0x18   :  { %34 = dma.hbm_to_vmem [thread:$0]  %s520_s1, 1024, %s29_s20, [#allocation6], %s481_s15, %s481_s15, %s482_s16  }
  0x19   :  { %474 = dma.done.wait [#allocation3], 1024  }
  0x1a   :  { %475 = vsyncadd [#allocation3], 4294966272 }
  0x1b   :  { %476 = dma.done.wait [#allocation6], 1024  }
  0x1c   :  { %477 = vsyncadd [#allocation6], 4294966272  ;;  %v398_v0 = vld [vmem:[#allocation5 + $0x38] sm:$0xff]   ;;  %v399_v1 = vld [vmem:[#allocation5 + $0x30] sm:$0xff]  }
  0x1d   :  { %343 = vmatprep.subr.bf16.mxu0 %v398_v0  ;;  %375 = vmatprep.subr.bf16.mxu1 %v398_v0  ;;  %v400_v2 = vld [vmem:[#allocation5 + $0x28] sm:$0xff]   ;;  %v401_v3 = vld [vmem:[#allocation5 + $0x20] sm:$0xff]   ;;  %v402_v6 = vld [vmem:[#allocation5 + $0x18] sm:$0xff]  }
  0x1e   :  { %344 = vmatpush3.bf16.msra.mxu0 %v398_v0  ;;  %383 = vmatpush3.bf16.msra.mxu1 %v398_v0  ;;  %v406_v4 = vld [vmem:[#allocation2] sm:$0xff]   ;;  %v403_v7 = vld [vmem:[#allocation5 + $0x10] sm:$0xff]   ;;  %v404_v8 = vld [vmem:[#allocation5 + $0x8] sm:$0xff]  }
  0x1f   :  { %345 = vmatprep.subr.bf16.mxu0 %v399_v1  ;;  %376 = vmatprep.subr.bf16.mxu1 %v399_v1  ;;  %v407_v5 = vld [vmem:[#allocation2 + $0x20] sm:$0xff]   ;;  %v408_v10 = vld [vmem:[#allocation2 + $0x8] sm:$0xff]   ;;  %v410_v12 = vld [vmem:[#allocation2 + $0x10] sm:$0xff]  }
  0x20   :  { %359 = vmatprep.mubr.bf16.mxu0 %v406_v4  ;;  %367 = vmatprep.mubr.bf16.mxu1 %v407_v5  ;;  %v405_v9 = vld [vmem:[#allocation5] sm:$0xff]   ;;  %v409_v11 = vld [vmem:[#allocation2 + $0x28] sm:$0xff]   ;;  %v411_v13 = vld [vmem:[#allocation2 + $0x30] sm:$0xff]  }
  0x21   :  { %v412_v14 = vld [vmem:[#allocation2 + $0x18] sm:$0xff]   ;;  %v310_v16 = vld [vmem:[%s521_s2] ss:$0 sm:$0xff]  ;;  %s484_s2 = smov [#allocation7]  }
  0x22   :  { %346 = vmatpush3.bf16.msra.mxu0 %v399_v1  ;;  %384 = vmatpush3.bf16.msra.mxu1 %v399_v1  ;;  %v413_v15 = vld [vmem:[#allocation2 + $0x38] sm:$0xff]   ;;  %s297_s24 = sshll.u32 %s484_s2, 4  ;;  %s298_s24 = int_to_ptr.vmem [resolvable:$true] %s297_s24 }
  0x23   :  { %347 = vmatprep.subr.bf16.mxu0 %v400_v2  ;;  %377 = vmatprep.subr.bf16.mxu1 %v400_v2  ;;  %s454_s25 = scalar_lea.vmem %s298_s24, 2048  ;;  %p459_p11 = scmp.lt.s32.totalorder %s298_s24, %s298_s24 }
  0x24   :  { %p455_p10 = scmp.ne.s32.totalorder %s298_s24, %s454_s25  ;;  %p460_p12 = scmp.lt.s32.totalorder %s454_s25, %s454_s25 }
  0x26   :  { %348 = vmatpush3.bf16.msra.mxu0 %v400_v2  ;;  %385 = vmatpush3.bf16.msra.mxu1 %v400_v2  ;;  %p461_p13 = por %p460_p12, %p459_p11 }
  0x27   :  { %349 = vmatprep.subr.bf16.mxu0 %v401_v3  ;;  %378 = vmatprep.subr.bf16.mxu1 %v401_v3 }
  0x28   :  { %p462_p0 = pnand %p461_p13, %p455_p10 }
  0x2a   :  { %350 = vmatpush3.bf16.msra.mxu0 %v401_v3  ;;  %386 = vmatpush3.bf16.msra.mxu1 %v401_v3 }
  0x2b   :  { %351 = vmatprep.subr.bf16.mxu0 %v402_v6  ;;  %379 = vmatprep.subr.bf16.mxu1 %v402_v6 }
  0x2e   :  { %352 = vmatpush3.bf16.msra.mxu0 %v402_v6  ;;  %387 = vmatpush3.bf16.msra.mxu1 %v402_v6 }
  0x2f   :  { %353 = vmatprep.subr.bf16.mxu0 %v403_v7  ;;  %380 = vmatprep.subr.bf16.mxu1 %v403_v7 }
  0x32   :  { %354 = vmatpush3.bf16.msra.mxu0 %v403_v7  ;;  %388 = vmatpush3.bf16.msra.mxu1 %v403_v7 }
  0x33   :  { %355 = vmatprep.subr.bf16.mxu0 %v404_v8  ;;  %381 = vmatprep.subr.bf16.mxu1 %v404_v8 }
  0x36   :  { %356 = vmatpush3.bf16.msra.mxu0 %v404_v8  ;;  %389 = vmatpush3.bf16.msra.mxu1 %v404_v8 }
  0x37   :  { %357 = vmatprep.subr.bf16.mxu0 %v405_v9  ;;  %382 = vmatprep.subr.bf16.mxu1 %v405_v9 }
  0x3a   :  { %358 = vmatpush3.bf16.msra.mxu0 %v405_v9  ;;  %390 = vmatpush3.bf16.msra.mxu1 %v405_v9 }
  0x3d   :  { %360 = vmatmul.mubr.bf16.vlgmr.msra.gmra.mxu0 %v408_v10  ;;  %368 = vmatmul.mubr.bf16.vlgmr.msra.gmra.mxu1 %v409_v11 }
  0x3e   :  { %363 = vmatprep.mubr.bf16.mxu0 %v410_v12  ;;  %371 = vmatprep.mubr.bf16.mxu1 %v411_v13 }
  0x45   :  { %364 = vmatmul.mubr.bf16.gmra.mxu0 %v412_v14  ;;  %372 = vmatmul.mubr.bf16.gmra.mxu1 %v413_v15 }
  0xfd   :  { %v361_v17 = vpop.f32.mrf.mxu0  ;;  %v369_v18 = vpop.f32.mrf.mxu1 }
  0xfe   :  { %v222_v19 = vadd.f32 %v361_v17, %v310_v16  ;;  %v254_v20 = vadd.f32 %v369_v18, %v310_v16 }
  0xff   :  { %v213_v21 = vpop.f32.mrf.mxu0  ;;  %v245_v22 = vpop.f32.mrf.mxu1 }
 0x100   :  { %278 = vst [vmem:[#allocation7 + $0x10] sm:$0xff] %v222_v19  ;;  %286 = vst [vmem:[#allocation7 + $0x50] sm:$0xff] %v254_v20  ;;  %v214_v23 = vadd.f32 %v310_v16, %v213_v21  ;;  %v246_v24 = vadd.f32 %v310_v16, %v245_v22 }
 0x101   :  { %v362_v25 = vpop.f32.mrf.mxu0  ;;  %v370_v26 = vpop.f32.mrf.mxu1 }
 0x102   :  { %276 = vst [vmem:[#allocation7] sm:$0xff] %v214_v23  ;;  %284 = vst [vmem:[#allocation7 + $0x40] sm:$0xff] %v246_v24  ;;  %v225_v27 = vadd.f32 %v362_v25, %v310_v16  ;;  %v257_v28 = vadd.f32 %v370_v26, %v310_v16 }
 0x103   :  { %v216_v29 = vpop.f32.mrf.mxu0  ;;  %v248_v30 = vpop.f32.mrf.mxu1 }
 0x104   :  { %279 = vst [vmem:[#allocation7 + $0x18] sm:$0xff] %v225_v27  ;;  %287 = vst [vmem:[#allocation7 + $0x58] sm:$0xff] %v257_v28  ;;  %v217_v31 = vadd.f32 %v310_v16, %v216_v29  ;;  %v249_v32 = vadd.f32 %v310_v16, %v248_v30 }
 0x105   :  { %v365_v33 = vpop.f32.mrf.mxu0  ;;  %v373_v34 = vpop.f32.mrf.mxu1 }
 0x106   :  { %277 = vst [vmem:[#allocation7 + $0x8] sm:$0xff] %v217_v31  ;;  %285 = vst [vmem:[#allocation7 + $0x48] sm:$0xff] %v249_v32  ;;  %v238_v35 = vadd.f32 %v365_v33, %v310_v16  ;;  %v270_v36 = vadd.f32 %v373_v34, %v310_v16 }
 0x107   :  { %v229_v37 = vpop.f32.mrf.mxu0  ;;  %v261_v38 = vpop.f32.mrf.mxu1 }
 0x108   :  { %282 = vst [vmem:[#allocation7 + $0x30] sm:$0xff] %v238_v35  ;;  %290 = vst [vmem:[#allocation7 + $0x70] sm:$0xff] %v270_v36  ;;  %v230_v39 = vadd.f32 %v310_v16, %v229_v37  ;;  %v262_v40 = vadd.f32 %v310_v16, %v261_v38 }
 0x109   :  { %v366_v41 = vpop.f32.mrf.mxu0  ;;  %v374_v42 = vpop.f32.mrf.mxu1 }
 0x10a   :  { %280 = vst [vmem:[#allocation7 + $0x20] sm:$0xff] %v230_v39  ;;  %288 = vst [vmem:[#allocation7 + $0x60] sm:$0xff] %v262_v40  ;;  %v241_v43 = vadd.f32 %v366_v41, %v310_v16  ;;  %v273_v44 = vadd.f32 %v374_v42, %v310_v16 }
 0x10b   :  { %v232_v45 = vpop.f32.mrf.mxu0  ;;  %v264_v46 = vpop.f32.mrf.mxu1 }
 0x10c   :  { %283 = vst [vmem:[#allocation7 + $0x38] sm:$0xff] %v241_v43  ;;  %291 = vst [vmem:[#allocation7 + $0x78] sm:$0xff] %v273_v44  ;;  %v233_v47 = vadd.f32 %v310_v16, %v232_v45  ;;  %v265_v48 = vadd.f32 %v310_v16, %v264_v46 }
 0x10e   :  { %281 = vst [vmem:[#allocation7 + $0x28] sm:$0xff] %v233_v47  ;;  %289 = vst [vmem:[#allocation7 + $0x68] sm:$0xff] %v265_v48 }
 0x10f   :  { %465 = shalt.err (!%p462_p0)
}
 0x110   :  { %s485_s26 = smov 128   ;;  %s486_s27 = smov 8  }
 0x111   :  { %303 = dma.vmem_to_hbm [thread:$0]  %s298_s24, 2048, %s522_s3, [#allocation4], %s485_s26, %s485_s26, %s486_s27  }
 0x112   :  { %478 = dma.done.wait [#allocation4], 2048  }
 0x113   :  { %479 = vsyncadd [#allocation4], 4294965248 }
 0x114   :  { %307 = vsyncpa [#allocation3], 1 }
 0x115   :  { %308 = vsyncpa [#allocation6], 1 }
 0x116   :  { %309 = vsyncpa [#allocation4], 1 }

</bundles_post_ra>
